<compile_context>
chip_gen: v6e
topology: v6e:2x2x1
jax: 0.10.0
libtpu: 0.0.40
codegen_flags: <defaults>
</compile_context>

<pallas_src>
import functools
import math

import jax
import jax.numpy as jnp
from jax import lax
from jax.experimental import pallas as pl
from jax.experimental.pallas import tpu as pltpu


# ---------------------------------------------------------------------------
# helpers
# ---------------------------------------------------------------------------

def _round_up(x, m):
    return (x + m - 1) // m * m


def _pad2d(a, rows, cols, value=0.0):
    pr, pc = rows - a.shape[0], cols - a.shape[1]
    if pr == 0 and pc == 0:
        return a
    return jnp.pad(a, ((0, pr), (0, pc)), constant_values=value)


# Scoped-VMEM request: lifts the 16/32 MiB default scoped limits (v5e/v6e) while
# staying inside v7x's 64 MiB physical VMEM with headroom for double-buffering.
_VMEM_LIMIT_BYTES = 48 * 1024 * 1024

_BN_EPS = 1e-5  # PyTorch BatchNorm1d default


# ---------------------------------------------------------------------------
# Kernel 1: fused MLP trunk
#   h1 = BN(relu(x @ w1 + b1));  h2 = h1 + BN(relu(h1 @ w2 + b2))
# Single invocation (no grid): the whole batch + all trunk weights are resident
# in VMEM, BN uses batch statistics over the resident rows, the residual add is
# done in-register.  Zero-padded K / H columns provably stay zero through the
# ReLU/BN chain, so padding never perturbs the real columns' statistics.
# ---------------------------------------------------------------------------

def _bn_batch(y, gamma, beta, eps):
    # BatchNorm1d with track_running_stats=False => batch statistics (biased var).
    mu = jnp.mean(y, axis=0, keepdims=True)
    var = jnp.mean(jnp.square(y - mu), axis=0, keepdims=True)
    return (y - mu) * lax.rsqrt(var + eps) * gamma + beta


def _mlp_residual_kernel(x_ref, w1_ref, b1_ref, g1_ref, be1_ref,
                         w2_ref, b2_ref, g2_ref, be2_ref, h2_ref, *, eps):
    # --- MLPBlock 1: Linear -> ReLU -> BatchNorm(batch stats) ----------------
    y1 = jnp.dot(x_ref[...], w1_ref[...], preferred_element_type=jnp.float32)
    y1 = jnp.maximum(y1 + b1_ref[...], 0.0)
    h1 = _bn_batch(y1, g1_ref[...], be1_ref[...], eps)          # f32 (M, Hp)
    # TODO(synk): nn.Dropout is identity at inference; train-mode masking is
    # not implemented here.

    # --- Residual(MLPBlock 2) ------------------------------------------------
    y2 = jnp.dot(h1.astype(jnp.bfloat16), w2_ref[...],
                 preferred_element_type=jnp.float32)
    y2 = jnp.maximum(y2 + b2_ref[...], 0.0)
    h2 = h1 + _bn_batch(y2, g2_ref[...], be2_ref[...], eps)

    h2_ref[...] = h2.astype(h2_ref.dtype)                        # bf16 store


def mlp_residual(x, w1, b1, g1, be1, w2, b2, g2, be2, *, eps=_BN_EPS,
                 out_dtype=jnp.bfloat16):
    """Fused trunk: returns h2 with the hidden axis padded to a 128 multiple."""
    M, K = x.shape
    H = w1.shape[1]
    Kp, Hp = _round_up(K, 128), _round_up(H, 128)

    # TODO(synk): assumes the whole (M, Hp) working set fits in VMEM (true for
    # typical inference batches; tile the batch axis for very large M).
    xp = _pad2d(x.astype(jnp.bfloat16), M, Kp)
    w1p = _pad2d(w1.astype(jnp.bfloat16), Kp, Hp)
    w2p = _pad2d(w2.astype(jnp.bfloat16), Hp, Hp)

    def row(v):
        return _pad2d(v.reshape(1, -1).astype(jnp.float32), 1, Hp)

    return pl.pallas_call(
        functools.partial(_mlp_residual_kernel, eps=eps),
        out_shape=jax.ShapeDtypeStruct((M, Hp), out_dtype),
        compiler_params=pltpu.CompilerParams(
            vmem_limit_bytes=_VMEM_LIMIT_BYTES,
        ),
    )(xp, w1p, row(b1), row(g1), row(be1), w2p, row(b2), row(g2), row(be2))


# ---------------------------------------------------------------------------
# Kernel 2: head GEMM with fused epilogue
#   logits = sigmoid( h2 @ (go_embed + hasFunc).T + |go_rad| )
# Grid = (GO-tile, row-tile); the GO (weight) axis is OUTERMOST so every head
# weight tile is streamed from HBM exactly once; K (=E) is collapsed into a
# single tile, so there is no accumulator.  The (+hasFunc) add, |rad| bias and
# sigmoid all happen on the tile while it is resident in VMEM.
# ---------------------------------------------------------------------------

def _head_kernel(h2_ref, go_ref, hf_ref, rad_ref, o_ref):
    # Build the head-weight tile in f32 (VPU-friendly on v5e), cast once for MXU.
    w = (go_ref[...].astype(jnp.float32) + hf_ref[...]).astype(jnp.bfloat16)
    # Contract over the embedding axis of the UNtransposed (tg, E) weight tile.
    s = lax.dot_general(h2_ref[...], w,
                        dimension_numbers=(((1,), (1,)), ((), ())),
                        preferred_element_type=jnp.float32)       # (tm, tg)
    s = s + jnp.abs(rad_ref[...])
    # sigmoid: exp and the approximate reciprocal both run on the EUP slot.
    o_ref[...] = pl.reciprocal(1.0 + jnp.exp(-s), approx=True).astype(o_ref.dtype)


def head_sigmoid(h2, go_embed, has_func, go_rad, *, out_dtype=jnp.float32):
    """h2:(M,Ep) bf16, go_embed:(G,E), has_func:(E,), go_rad:(G,) -> (M,G)."""
    M, Ep = h2.shape
    G, E = go_embed.shape
    assert E <= Ep

    # Large lane-dense GO tiles: the head is weight-stream (HBM) bound.
    tg = 512 if G >= 512 else _round_up(G, 128)
    Gp = _round_up(G, tg)
    # Row tile: full batch when small (typical), else 256 (bf16 packs 2 rows/sublane).
    tm = 256 if (M >= 256 and M % 256 == 0) else M

    go_p = _pad2d(go_embed.astype(jnp.bfloat16), Gp, Ep)
    hf_p = _pad2d(has_func.reshape(1, -1).astype(jnp.float32), 1, Ep)
    rad_p = _pad2d(go_rad.reshape(1, -1).astype(jnp.float32), 1, Gp)

    grid = (Gp // tg, M // tm)   # weight-tile axis OUTER -> each tile DMA'd once

    cost = pl.CostEstimate(
        flops=2 * M * Gp * Ep,
        transcendentals=2 * M * Gp,                       # exp + reciprocal
        bytes_accessed=int(go_p.size * 2 + rad_p.size * 4 + hf_p.size * 4
                           + h2.size * 2 * (Gp // tg)
                           + M * Gp * jnp.dtype(out_dtype).itemsize),
    )

    out = pl.pallas_call(
        _head_kernel,
        out_shape=jax.ShapeDtypeStruct((M, Gp), out_dtype),
        grid_spec=pltpu.PrefetchScalarGridSpec(
            num_scalar_prefetch=0,
            grid=grid,
            in_specs=[
                # h2: small, re-streamed per GO tile (constant across inner axis).
                pl.BlockSpec((tm, Ep), lambda j, i: (i, 0)),
                # go_embed: the heavy stream, one tile per OUTER step only.
                pl.BlockSpec((tg, Ep), lambda j, i: (j, 0)),
                # hasFunc row: resident for the whole grid.
                pl.BlockSpec((1, Ep), lambda j, i: (0, 0)),
                # go_rad row tile matching the GO tile.
                pl.BlockSpec((1, tg), lambda j, i: (0, j)),
            ],
            out_specs=pl.BlockSpec((tm, tg), lambda j, i: (i, j)),
        ),
        compiler_params=pltpu.CompilerParams(
            # Both axes independent -> shard across v7x's two TensorCores.
            dimension_semantics=("parallel", "parallel"),
            vmem_limit_bytes=_VMEM_LIMIT_BYTES,
        ),
        cost_estimate=cost,
    )(h2, go_p, hf_p, rad_p)

    return out[:, :G]


# ---------------------------------------------------------------------------
# DGELModel.forward
# ---------------------------------------------------------------------------

def dgel_forward(params, features, *, nb_gos, nb_rels):
    """Pallas implementation of DGELModel.forward (inference)."""
    # Fused MLP trunk (Linear+ReLU+BN, Residual(Linear+ReLU+BN)) -> bf16 h2.
    h2 = mlp_residual(features,
                      params["w1"], params["b1"],
                      params["bn1_gamma"], params["bn1_beta"],
                      params["w2"], params["b2"],
                      params["bn2_gamma"], params["bn2_beta"])

    # Head: tiny embedding slices are host glue; the (+hasFunc) add, GEMM,
    # |rad| bias and sigmoid are all fused inside the Pallas kernel.
    go_embed = params["go_embed_w"][:nb_gos]          # go_embed(all_gos): (G, E)
    has_func = params["rel_embed_w"][nb_rels]         # rel_embed(hasFuncIndex)
    go_rad = params["go_rad_w"][:nb_gos, 0]           # (G,), abs taken in-kernel
    return head_sigmoid(h2, go_embed, has_func, go_rad)


# ---------------------------------------------------------------------------
# pure-JAX reference (emulates the kernels' bf16 MXU operands / f32 math)
# ---------------------------------------------------------------------------

def _reference_forward(params, features, *, nb_gos, nb_rels):
    def mm(a, b):
        return jnp.dot(a.astype(jnp.bfloat16), b.astype(jnp.bfloat16),
                       preferred_element_type=jnp.float32)

    def bn(y, g, b, eps=_BN_EPS):
        mu = jnp.mean(y, axis=0, keepdims=True)
        var = jnp.mean(jnp.square(y - mu), axis=0, keepdims=True)
        return (y - mu) * lax.rsqrt(var + eps) * g + b

    y1 = jnp.maximum(mm(features, params["w1"]) + params["b1"], 0.0)
    h1 = bn(y1, params["bn1_gamma"], params["bn1_beta"])
    y2 = jnp.maximum(mm(h1, params["w2"]) + params["b2"], 0.0)
    h2 = (h1 + bn(y2, params["bn2_gamma"], params["bn2_beta"])).astype(jnp.bfloat16)

    go_embed = params["go_embed_w"][:nb_gos]
    has_func = params["rel_embed_w"][nb_rels]
    w = (go_embed.astype(jnp.bfloat16).astype(jnp.float32)
         + has_func).astype(jnp.bfloat16)
    go_rad = jnp.abs(params["go_rad_w"][:nb_gos, 0])
    x = jnp.dot(h2, w.T, preferred_element_type=jnp.float32) + go_rad
    return 1.0 / (1.0 + jnp.exp(-x))


# ---------------------------------------------------------------------------
# demo
# ---------------------------------------------------------------------------

if __name__ == "__main__":
    key = jax.random.PRNGKey(0)
    keys = jax.random.split(key, 12)

    # Small shapes; nb_iprs / nb_gos deliberately NOT 128-multiples so the
    # padding paths (K pad, GO pad + output slice) are exercised.
    batch = 16
    nb_iprs = 320
    hidden_dim = 256
    embed_dim = 256
    nb_gos = 1000
    nb_zero_gos = 24
    nb_rels = 4

    k = math.sqrt(1.0 / embed_dim)
    params = {
        # Linear weights stored (in_features, out_features) == PyTorch W.T
        "w1": jax.random.normal(keys[0], (nb_iprs, hidden_dim), jnp.float32)
              * (1.0 / math.sqrt(nb_iprs)),
        "b1": 0.02 * jax.random.normal(keys[1], (hidden_dim,), jnp.float32),
        "bn1_gamma": 1.0 + 0.1 * jax.random.normal(keys[2], (hidden_dim,), jnp.float32),
        "bn1_beta": 0.1 * jax.random.normal(keys[3], (hidden_dim,), jnp.float32),
        "w2": jax.random.normal(keys[4], (hidden_dim, hidden_dim), jnp.float32)
              * (1.0 / math.sqrt(hidden_dim)),
        "b2": 0.02 * jax.random.normal(keys[5], (hidden_dim,), jnp.float32),
        "bn2_gamma": 1.0 + 0.1 * jax.random.normal(keys[6], (hidden_dim,), jnp.float32),
        "bn2_beta": 0.1 * jax.random.normal(keys[7], (hidden_dim,), jnp.float32),
        "go_embed_w": jax.random.uniform(keys[8], (nb_gos + nb_zero_gos, embed_dim),
                                         jnp.float32, -k, k),
        "go_rad_w": jax.random.uniform(keys[9], (nb_gos + nb_zero_gos, 1),
                                       jnp.float32, -k, k),
        "rel_embed_w": jax.random.uniform(keys[10], (nb_rels + 1, embed_dim),
                                          jnp.float32, -k, k),
    }
    features = jax.random.normal(keys[11], (batch, nb_iprs), jnp.float32)

    logits = dgel_forward(params, features, nb_gos=nb_gos, nb_rels=nb_rels)
    jax.block_until_ready(logits)

    ref = _reference_forward(params, features, nb_gos=nb_gos, nb_rels=nb_rels)
    assert logits.shape == (batch, nb_gos)
    assert bool(jnp.all(jnp.isfinite(logits)))
    assert jnp.allclose(logits, ref, atol=5e-3, rtol=0.0)

    print("KERNEL_OK")
</pallas_src>

<mosaic_0001>
module attributes {stable_mosaic.version = 11 : i64} {
  func.func @_mlp_residual_kernel(%arg0: memref<16x384xbf16, #tpu.memory_space<vmem>>, %arg1: memref<384x256xbf16, #tpu.memory_space<vmem>>, %arg2: memref<1x256xf32, #tpu.memory_space<vmem>>, %arg3: memref<1x256xf32, #tpu.memory_space<vmem>>, %arg4: memref<1x256xf32, #tpu.memory_space<vmem>>, %arg5: memref<256x256xbf16, #tpu.memory_space<vmem>>, %arg6: memref<1x256xf32, #tpu.memory_space<vmem>>, %arg7: memref<1x256xf32, #tpu.memory_space<vmem>>, %arg8: memref<1x256xf32, #tpu.memory_space<vmem>>, %arg9: memref<16x256xbf16, #tpu.memory_space<vmem>>) attributes {dimension_semantics = [], scalar_prefetch = 0 : i64, scratch_operands = 0 : i64, tpu.core_type = #tpu.core_type<tc>} {
    %c0 = arith.constant 0 : index
    %c0_0 = arith.constant 0 : index
    %0 = vector.load %arg0[%c0, %c0_0] : memref<16x384xbf16, #tpu.memory_space<vmem>>, vector<16x384xbf16>
    %c0_1 = arith.constant 0 : index
    %c0_2 = arith.constant 0 : index
    %1 = vector.load %arg1[%c0_1, %c0_2] : memref<384x256xbf16, #tpu.memory_space<vmem>>, vector<384x256xbf16>
    %cst = arith.constant dense<0.000000e+00> : vector<16x256xf32>
    %2 = tpu.matmul %0, %1, %cst {dimension_numbers = #tpu.dot_dimension_numbers<[1], [0], [0], [1], [0, 0, 1, 1], [], []>} : vector<16x384xbf16>, vector<384x256xbf16>, vector<16x256xf32> -> vector<16x256xf32>
    %c0_3 = arith.constant 0 : index
    %c0_4 = arith.constant 0 : index
    %3 = vector.load %arg2[%c0_3, %c0_4] : memref<1x256xf32, #tpu.memory_space<vmem>>, vector<1x256xf32>
    %4 = vector.broadcast %3 : vector<1x256xf32> to vector<16x256xf32>
    %5 = arith.addf %2, %4 : vector<16x256xf32>
    %cst_5 = arith.constant 0.000000e+00 : f32
    %6 = vector.broadcast %cst_5 : f32 to vector<16x256xf32>
    %7 = arith.maximumf %5, %6 : vector<16x256xf32>
    %c0_6 = arith.constant 0 : index
    %c0_7 = arith.constant 0 : index
    %8 = vector.load %arg3[%c0_6, %c0_7] : memref<1x256xf32, #tpu.memory_space<vmem>>, vector<1x256xf32>
    %c0_8 = arith.constant 0 : index
    %c0_9 = arith.constant 0 : index
    %9 = vector.load %arg4[%c0_8, %c0_9] : memref<1x256xf32, #tpu.memory_space<vmem>>, vector<1x256xf32>
    %cst_10 = arith.constant dense<0.000000e+00> : vector<256xf32>
    %10 = vector.multi_reduction <add>, %7, %cst_10 [0] : vector<16x256xf32> to vector<256xf32>
    %11 = vector.shape_cast %10 : vector<256xf32> to vector<1x256xf32>
    %cst_11 = arith.constant 1.600000e+01 : f32
    %12 = vector.broadcast %cst_11 : f32 to vector<1x256xf32>
    %13 = arith.divf %11, %12 : vector<1x256xf32>
    %14 = vector.broadcast %13 : vector<1x256xf32> to vector<16x256xf32>
    %15 = arith.subf %7, %14 : vector<16x256xf32>
    %16 = arith.mulf %15, %15 : vector<16x256xf32>
    %cst_12 = arith.constant dense<0.000000e+00> : vector<256xf32>
    %17 = vector.multi_reduction <add>, %16, %cst_12 [0] : vector<16x256xf32> to vector<256xf32>
    %18 = vector.shape_cast %17 : vector<256xf32> to vector<1x256xf32>
    %cst_13 = arith.constant 1.600000e+01 : f32
    %19 = vector.broadcast %cst_13 : f32 to vector<1x256xf32>
    %20 = arith.divf %18, %19 : vector<1x256xf32>
    %21 = vector.broadcast %13 : vector<1x256xf32> to vector<16x256xf32>
    %22 = arith.subf %7, %21 : vector<16x256xf32>
    %cst_14 = arith.constant 9.99999974E-6 : f32
    %23 = vector.broadcast %cst_14 : f32 to vector<1x256xf32>
    %24 = arith.addf %20, %23 : vector<1x256xf32>
    %25 = math.rsqrt %24 : vector<1x256xf32>
    %26 = vector.broadcast %25 : vector<1x256xf32> to vector<16x256xf32>
    %27 = arith.mulf %22, %26 : vector<16x256xf32>
    %28 = vector.broadcast %8 : vector<1x256xf32> to vector<16x256xf32>
    %29 = arith.mulf %27, %28 : vector<16x256xf32>
    %30 = vector.broadcast %9 : vector<1x256xf32> to vector<16x256xf32>
    %31 = arith.addf %29, %30 : vector<16x256xf32>
    %32 = arith.truncf %31 : vector<16x256xf32> to vector<16x256xbf16>
    %c0_15 = arith.constant 0 : index
    %c0_16 = arith.constant 0 : index
    %33 = vector.load %arg5[%c0_15, %c0_16] : memref<256x256xbf16, #tpu.memory_space<vmem>>, vector<256x256xbf16>
    %cst_17 = arith.constant dense<0.000000e+00> : vector<16x256xf32>
    %34 = tpu.matmul %32, %33, %cst_17 {dimension_numbers = #tpu.dot_dimension_numbers<[1], [0], [0], [1], [0, 0, 1, 1], [], []>} : vector<16x256xbf16>, vector<256x256xbf16>, vector<16x256xf32> -> vector<16x256xf32>
    %c0_18 = arith.constant 0 : index
    %c0_19 = arith.constant 0 : index
    %35 = vector.load %arg6[%c0_18, %c0_19] : memref<1x256xf32, #tpu.memory_space<vmem>>, vector<1x256xf32>
    %36 = vector.broadcast %35 : vector<1x256xf32> to vector<16x256xf32>
    %37 = arith.addf %34, %36 : vector<16x256xf32>
    %cst_20 = arith.constant 0.000000e+00 : f32
    %38 = vector.broadcast %cst_20 : f32 to vector<16x256xf32>
    %39 = arith.maximumf %37, %38 : vector<16x256xf32>
    %c0_21 = arith.constant 0 : index
    %c0_22 = arith.constant 0 : index
    %40 = vector.load %arg7[%c0_21, %c0_22] : memref<1x256xf32, #tpu.memory_space<vmem>>, vector<1x256xf32>
    %c0_23 = arith.constant 0 : index
    %c0_24 = arith.constant 0 : index
    %41 = vector.load %arg8[%c0_23, %c0_24] : memref<1x256xf32, #tpu.memory_space<vmem>>, vector<1x256xf32>
    %cst_25 = arith.constant dense<0.000000e+00> : vector<256xf32>
    %42 = vector.multi_reduction <add>, %39, %cst_25 [0] : vector<16x256xf32> to vector<256xf32>
    %43 = vector.shape_cast %42 : vector<256xf32> to vector<1x256xf32>
    %cst_26 = arith.constant 1.600000e+01 : f32
    %44 = vector.broadcast %cst_26 : f32 to vector<1x256xf32>
    %45 = arith.divf %43, %44 : vector<1x256xf32>
    %46 = vector.broadcast %45 : vector<1x256xf32> to vector<16x256xf32>
    %47 = arith.subf %39, %46 : vector<16x256xf32>
    %48 = arith.mulf %47, %47 : vector<16x256xf32>
    %cst_27 = arith.constant dense<0.000000e+00> : vector<256xf32>
    %49 = vector.multi_reduction <add>, %48, %cst_27 [0] : vector<16x256xf32> to vector<256xf32>
    %50 = vector.shape_cast %49 : vector<256xf32> to vector<1x256xf32>
    %cst_28 = arith.constant 1.600000e+01 : f32
    %51 = vector.broadcast %cst_28 : f32 to vector<1x256xf32>
    %52 = arith.divf %50, %51 : vector<1x256xf32>
    %53 = vector.broadcast %45 : vector<1x256xf32> to vector<16x256xf32>
    %54 = arith.subf %39, %53 : vector<16x256xf32>
    %cst_29 = arith.constant 9.99999974E-6 : f32
    %55 = vector.broadcast %cst_29 : f32 to vector<1x256xf32>
    %56 = arith.addf %52, %55 : vector<1x256xf32>
    %57 = math.rsqrt %56 : vector<1x256xf32>
    %58 = vector.broadcast %57 : vector<1x256xf32> to vector<16x256xf32>
    %59 = arith.mulf %54, %58 : vector<16x256xf32>
    %60 = vector.broadcast %40 : vector<1x256xf32> to vector<16x256xf32>
    %61 = arith.mulf %59, %60 : vector<16x256xf32>
    %62 = vector.broadcast %41 : vector<1x256xf32> to vector<16x256xf32>
    %63 = arith.addf %61, %62 : vector<16x256xf32>
    %64 = arith.addf %31, %63 : vector<16x256xf32>
    %65 = arith.truncf %64 : vector<16x256xf32> to vector<16x256xbf16>
    %c0_30 = arith.constant 0 : index
    %c0_31 = arith.constant 0 : index
    %66 = vector.load %arg9[%c0_30, %c0_31] : memref<16x256xbf16, #tpu.memory_space<vmem>>, vector<16x256xbf16>
    tpu.vector_store %arg9[%c0_30, %c0_31], %65 {strides = array<i32>} : memref<16x256xbf16, #tpu.memory_space<vmem>>, vector<16x256xbf16>,
    return
  }
}

</mosaic_0001>

<bundles_post_ra>
// kernel: tpu_custom_call.1
= control target key start
LH: loop header
LB: loop body
LE: loop exit
PB: predicated region body
PF: predicated region fallthrough
CT: control target
= control target key end

     0   :  { %14 = vsyncpa [#allocation3], 0  ;;  %s1379_s0 = inlined_call_operand.hbm [shape: bf16[16,384], index: 0, kind: input, shape index: {}]   ;;  %s1380_s1 = inlined_call_operand.hbm [shape: bf16[384,256], index: 1, kind: input, shape index: {}]   ;;  %s1381_s2 = inlined_call_operand.vmem [shape: f32[1,256], index: 2, kind: input, shape index: {}]   ;;  %s1382_s3 = inlined_call_operand.vmem [shape: f32[1,256], index: 3, kind: input, shape index: {}]   ;;  %s1383_s4 = inlined_call_operand.vmem [shape: f32[1,256], index: 4, kind: input, shape index: {}]   ;;  %s1384_s5 = inlined_call_operand.hbm [shape: bf16[256,256], index: 5, kind: input, shape index: {}]   ;;  %s1385_s6 = inlined_call_operand.vmem [shape: f32[1,256], index: 6, kind: input, shape index: {}]   ;;  %s1386_s7 = inlined_call_operand.vmem [shape: f32[1,256], index: 7, kind: input, shape index: {}]   ;;  %s1387_s8 = inlined_call_operand.vmem [shape: f32[1,256], index: 8, kind: input, shape index: {}]   ;;  %s1388_s9 = inlined_call_operand.hbm [shape: bf16[16,256], index: 9, kind: output, shape index: {}]  }
   0x1   :  { %15 = vsyncpa [#allocation6], 0 }
   0x2   :  { %16 = vsyncpa [#allocation4], 0  ;;  %s1249_s30 = smov [#allocation5]  }
   0x3   :  { %s34_s10 = sshll.u32 %s1249_s30, 4  ;;  %s35_s10 = int_to_ptr.vmem [resolvable:$true] %s34_s10 }
   0x4   :  { %s1171_s11 = scalar_lea.vmem %s35_s10, 6144  ;;  %p1176_p1 = scmp.lt.s32.totalorder %s35_s10, %s35_s10 }
   0x5   :  { %p1172_p0 = scmp.ne.s32.totalorder %s35_s10, %s1171_s11  ;;  %p1177_p2 = scmp.lt.s32.totalorder %s1171_s11, %s1171_s11 }
   0x7   :  { %p1178_p3 = por %p1177_p2, %p1176_p1 }
   0x9   :  { %p1179_p4 = pnand %p1178_p3, %p1172_p0 }
   0xb   :  { %1182 = shalt.err (!%p1179_p4)
}
   0xc   :  { %s1250_s12 = smov 128   ;;  %s1251_s13 = smov 8  }
   0xd   :  { %40 = dma.hbm_to_vmem [thread:$0]  %s1380_s1, 6144, %s35_s10, [#allocation6], %s1250_s12, %s1250_s12, %s1251_s13  }
   0xe   :  { %s1252_s16 = smov [#allocation2]  }
   0xf   :  { %s22_s17 = sshll.u32 %s1252_s16, 4  ;;  %s23_s17 = int_to_ptr.vmem [resolvable:$true] %s22_s17 }
  0x10   :  { %s1191_s18 = scalar_lea.vmem %s23_s17, 384  ;;  %p1196_p6 = scmp.lt.s32.totalorder %s23_s17, %s23_s17 }
  0x11   :  { %p1192_p5 = scmp.ne.s32.totalorder %s23_s17, %s1191_s18  ;;  %p1197_p7 = scmp.lt.s32.totalorder %s1191_s18, %s1191_s18 }
  0x13   :  { %p1198_p8 = por %p1197_p7, %p1196_p6 }
  0x15   :  { %p1199_p9 = pnand %p1198_p8, %p1192_p5 }
  0x17   :  { %1202 = shalt.err (!%p1199_p9)
}
  0x18   :  { %s1253_s19 = smov 192   ;;  %s1254_s20 = smov 12  }
  0x19   :  { %28 = dma.hbm_to_vmem [thread:$0]  %s1379_s0, 384, %s23_s17, [#allocation3], %s1253_s19, %s1253_s19, %s1254_s20  }
  0x1a   :  { %s1255_s23 = smov [#allocation7]  }
  0x1b   :  { %s52_s24 = sshll.u32 %s1255_s23, 4  ;;  %s53_s24 = int_to_ptr.vmem [resolvable:$true] %s52_s24 }
  0x1c   :  { %s1211_s1 = scalar_lea.vmem %s53_s24, 4096  ;;  %p1216_p11 = scmp.lt.s32.totalorder %s53_s24, %s53_s24 }
  0x1d   :  { %p1212_p10 = scmp.ne.s32.totalorder %s53_s24, %s1211_s1  ;;  %p1217_p12 = scmp.lt.s32.totalorder %s1211_s1, %s1211_s1 }
  0x1f   :  { %p1218_p13 = por %p1217_p12, %p1216_p11 }
  0x21   :  { %p1219_p0 = pnand %p1218_p13, %p1212_p10 }
  0x23   :  { %1222 = shalt.err (!%p1219_p0)
}
  0x24   :  { %58 = dma.hbm_to_vmem [thread:$0]  %s1384_s5, 4096, %s53_s24, [#allocation6], %s1250_s12, %s1250_s12, %s1251_s13  }
  0x25   :  { %1243 = dma.done.wait [#allocation3], 384  }
  0x26   :  { %1244 = vsyncadd [#allocation3], 4294966912 }
  0x27   :  { %1245 = dma.done.wait [#allocation6], 10240  }
  0x28   :  { %1246 = vsyncadd [#allocation6], 4294957056  ;;  %v1256_v0 = vmov 0   ;;  %v1031_v1 = vld [vmem:[#allocation5 + $0x74] ss:$8 sps:$4 sm:$0xff]  }
  0x29   :  { %470 = vmatprep.mubr.bf16.mxu1 %v1256_v0  ;;  %v1033_v2 = vld [vmem:[#allocation5 + $0x70] ss:$8 sps:$4 sm:$0xff]   ;;  %395 = vmatprep.subr.bf16.mxu0 %v1031_v1  ;;  %v1034_v3 = vld [vmem:[#allocation5 + $0x64] ss:$8 sps:$4 sm:$0xff]   ;;  %v1036_v4 = vld [vmem:[#allocation5 + $0x60] ss:$8 sps:$4 sm:$0xff]  }
  0x2a   :  { %396 = vmatpush1.bf16.msra.mxu0 %v1033_v2  ;;  %v1037_v5 = vld [vmem:[#allocation5 + $0x54] ss:$8 sps:$4 sm:$0xff]   ;;  %v1039_v6 = vld [vmem:[#allocation5 + $0x50] ss:$8 sps:$4 sm:$0xff]   ;;  %v1040_v7 = vld [vmem:[#allocation5 + $0x44] ss:$8 sps:$4 sm:$0xff]  }
  0x2b   :  { %397 = vmatprep.subr.bf16.mxu0 %v1034_v3  ;;  %v1042_v8 = vld [vmem:[#allocation5 + $0x40] ss:$8 sps:$4 sm:$0xff]   ;;  %v1054_v9 = vld [vmem:[#allocation5 + $0x174] ss:$8 sps:$4 sm:$0xff]   ;;  %v1057_v10 = vld [vmem:[#allocation5 + $0x170] ss:$8 sps:$4 sm:$0xff]  }
  0x2c   :  { %v1043_v11 = vld [vmem:[#allocation5 + $0x34] ss:$8 sps:$4 sm:$0xff]   ;;  %438 = vmatprep.subr.bf16.mxu1 %v1054_v9  ;;  %v1060_v12 = vld [vmem:[#allocation5 + $0x164] ss:$8 sps:$4 sm:$0xff]   ;;  %v1063_v13 = vld [vmem:[#allocation5 + $0x160] ss:$8 sps:$4 sm:$0xff]  }
  0x2d   :  { %439 = vmatpush1.bf16.msra.mxu1 %v1057_v10  ;;  %v1045_v14 = vld [vmem:[#allocation5 + $0x30] ss:$8 sps:$4 sm:$0xff]   ;;  %v1046_v15 = vld [vmem:[#allocation5 + $0x24] ss:$8 sps:$4 sm:$0xff]   ;;  %v1066_v16 = vld [vmem:[#allocation5 + $0x154] ss:$8 sps:$4 sm:$0xff]  }
  0x2e   :  { %398 = vmatpush1.bf16.msra.mxu0 %v1036_v4  ;;  %440 = vmatprep.subr.bf16.mxu1 %v1060_v12  ;;  %v1069_v17 = vld [vmem:[#allocation5 + $0x150] ss:$8 sps:$4 sm:$0xff]   ;;  %v1048_v18 = vld [vmem:[#allocation5 + $0x20] ss:$8 sps:$4 sm:$0xff]   ;;  %v1072_v19 = vld [vmem:[#allocation5 + $0x144] ss:$8 sps:$4 sm:$0xff]  }
  0x2f   :  { %399 = vmatprep.subr.bf16.mxu0 %v1037_v5  ;;  %v1049_v20 = vld [vmem:[#allocation5 + $0x14] ss:$8 sps:$4 sm:$0xff]   ;;  %v1051_v21 = vld [vmem:[#allocation5 + $0x10] ss:$8 sps:$4 sm:$0xff]   ;;  %v1075_v22 = vld [vmem:[#allocation5 + $0x140] ss:$8 sps:$4 sm:$0xff]  }
  0x30   :  { %v1078_v23 = vld [vmem:[#allocation5 + $0x134] ss:$8 sps:$4 sm:$0xff]   ;;  %v1052_v24 = vld [vmem:[#allocation5 + $0x4] ss:$8 sps:$4 sm:$0xff]   ;;  %v1081_v25 = vld [vmem:[#allocation5 + $0x130] ss:$8 sps:$4 sm:$0xff]  }
  0x31   :  { %441 = vmatpush1.bf16.msra.mxu1 %v1063_v13  ;;  %v1056_v26 = vld [vmem:[#allocation5] ss:$8 sps:$4 sm:$0xff]   ;;  %v1084_v27 = vld [vmem:[#allocation5 + $0x124] ss:$8 sps:$4 sm:$0xff]   ;;  %v1058_v28 = vld [vmem:[#allocation5 + $0xf4] ss:$8 sps:$4 sm:$0xff]  }
  0x32   :  { %400 = vmatpush1.bf16.msra.mxu0 %v1039_v6  ;;  %442 = vmatprep.subr.bf16.mxu1 %v1066_v16  ;;  %v1062_v29 = vld [vmem:[#allocation5 + $0xf0] ss:$8 sps:$4 sm:$0xff]   ;;  %v1087_v30 = vld [vmem:[#allocation5 + $0x120] ss:$8 sps:$4 sm:$0xff]   ;;  %v1090_v31 = vld [vmem:[#allocation5 + $0x114] ss:$8 sps:$4 sm:$0xff]  }
  0x33   :  { %401 = vmatprep.subr.bf16.mxu0 %v1040_v7  ;;  %v1064_v32 = vld [vmem:[#allocation5 + $0xe4] ss:$8 sps:$4 sm:$0xff]   ;;  %v1093_v33 = vld [vmem:[#allocation5 + $0x110] ss:$8 sps:$4 sm:$0xff]   ;;  %v1068_v34 = vld [vmem:[#allocation5 + $0xe0] ss:$8 sps:$4 sm:$0xff]  }
  0x34   :  { %v1096_v35 = vld [vmem:[#allocation5 + $0x104] ss:$8 sps:$4 sm:$0xff]   ;;  %v1070_v36 = vld [vmem:[#allocation5 + $0xd4] ss:$8 sps:$4 sm:$0xff]   ;;  %v1099_v38 = vld [vmem:[#allocation5 + $0x100] ss:$8 sps:$4 sm:$0xff]  }
  0x35   :  { %443 = vmatpush1.bf16.msra.mxu1 %v1069_v17  ;;  %v1106_v37 = vld [vmem:[#allocation2 + $0x4] ss:$12 sps:$4 sm:$0xff]   ;;  %v1102_v41 = vld [vmem:[#allocation2 + $0x8] ss:$12 sps:$4 sm:$0xff]   ;;  %v1080_v42 = vld [vmem:[#allocation5 + $0xc0] ss:$8 sps:$4 sm:$0xff]  }
  0x36   :  { %402 = vmatpush1.bf16.msra.mxu0 %v1042_v8  ;;  %444 = vmatprep.subr.bf16.mxu1 %v1072_v19  ;;  %v1074_v39 = vld [vmem:[#allocation5 + $0xd0] ss:$8 sps:$4 sm:$0xff]   ;;  %v1076_v40 = vld [vmem:[#allocation5 + $0xc4] ss:$8 sps:$4 sm:$0xff]   ;;  %v1082_v43 = vld [vmem:[#allocation5 + $0xb4] ss:$8 sps:$4 sm:$0xff]  }
  0x37   :  { %403 = vmatprep.subr.bf16.mxu0 %v1043_v11  ;;  %427 = vmatprep.mubr.bf16.mxu0 %v1106_v37  ;;  %v1086_v44 = vld [vmem:[#allocation5 + $0xb0] ss:$8 sps:$4 sm:$0xff]   ;;  %v1088_v45 = vld [vmem:[#allocation5 + $0xa4] ss:$8 sps:$4 sm:$0xff]   ;;  %v1092_v46 = vld [vmem:[#allocation5 + $0xa0] ss:$8 sps:$4 sm:$0xff]  }
  0x38   :  { %v1094_v47 = vld [vmem:[#allocation5 + $0x94] ss:$8 sps:$4 sm:$0xff]   ;;  %v1098_v48 = vld [vmem:[#allocation5 + $0x90] ss:$8 sps:$4 sm:$0xff]   ;;  %v1100_v49 = vld [vmem:[#allocation5 + $0x84] ss:$8 sps:$4 sm:$0xff]  }
  0x39   :  { %445 = vmatpush1.bf16.msra.mxu1 %v1075_v22  ;;  %v1103_v50 = vld [vmem:[#allocation5 + $0x80] ss:$8 sps:$4 sm:$0xff]   ;;  %v1109_v52 = vld [vmem:[#allocation7 + $0x74] ss:$8 sps:$4 sm:$0xff]   ;;  %v1107_v53 = vld [vmem:[#allocation7 + $0x70] ss:$8 sps:$4 sm:$0xff]  }
  0x3a   :  { %404 = vmatpush1.bf16.msra.mxu0 %v1045_v14  ;;  %446 = vmatprep.subr.bf16.mxu1 %v1078_v23  ;;  %v1104_v51 = vld [vmem:[#allocation2] ss:$12 sps:$4 sm:$0xff]   ;;  %v1112_v54 = vld [vmem:[#allocation7 + $0x64] ss:$8 sps:$4 sm:$0xff]   ;;  %v1113_v57 = vld [vmem:[#allocation7 + $0x50] ss:$8 sps:$4 sm:$0xff]  }
  0x3b   :  { %405 = vmatprep.subr.bf16.mxu0 %v1046_v15  ;;  %v1110_v55 = vld [vmem:[#allocation7 + $0x60] ss:$8 sps:$4 sm:$0xff]   ;;  %v1115_v56 = vld [vmem:[#allocation7 + $0x54] ss:$8 sps:$4 sm:$0xff]   ;;  %v1118_v58 = vld [vmem:[#allocation7 + $0x44] ss:$8 sps:$4 sm:$0xff]  }
  0x3c   :  { %v1116_v59 = vld [vmem:[#allocation7 + $0x40] ss:$8 sps:$4 sm:$0xff]   ;;  %v1121_v60 = vld [vmem:[#allocation7 + $0x34] ss:$8 sps:$4 sm:$0xff]   ;;  %v1119_v61 = vld [vmem:[#allocation7 + $0x30] ss:$8 sps:$4 sm:$0xff]  }
  0x3d   :  { %447 = vmatpush1.bf16.msra.mxu1 %v1081_v25  ;;  %v1124_v62 = vld [vmem:[#allocation7 + $0x24] ss:$8 sps:$4 sm:$0xff]   ;;  %v1122_v63 = vld [vmem:[#allocation7 + $0x20] ss:$8 sps:$4 sm:$0xff]   ;;  %v1127_v0 = vld [vmem:[#allocation7 + $0x14] ss:$8 sps:$4 sm:$0xff]  }
  0x3e   :  { %406 = vmatpush1.bf16.msra.mxu0 %v1048_v18  ;;  %448 = vmatprep.subr.bf16.mxu1 %v1084_v27  ;;  %v1125_v1 = vld [vmem:[#allocation7 + $0x10] ss:$8 sps:$4 sm:$0xff]   ;;  %v1130_v2 = vld [vmem:[#allocation7 + $0x4] ss:$8 sps:$4 sm:$0xff]   ;;  %v1128_v3 = vld [vmem:[#allocation7] ss:$8 sps:$4 sm:$0xff]  }
  0x3f   :  { %407 = vmatprep.subr.bf16.mxu0 %v1049_v20  ;;  %v1133_v4 = vld [vmem:[#allocation7 + $0xf4] ss:$8 sps:$4 sm:$0xff]   ;;  %v1131_v5 = vld [vmem:[#allocation7 + $0xf0] ss:$8 sps:$4 sm:$0xff]   ;;  %v1136_v6 = vld [vmem:[#allocation7 + $0xe4] ss:$8 sps:$4 sm:$0xff]   ;;  %v129_v20 = vlaneseq }
  0x40   :  { %v1134_v7 = vld [vmem:[#allocation7 + $0xe0] ss:$8 sps:$4 sm:$0xff]   ;;  %v1139_v8 = vld [vmem:[#allocation7 + $0xd4] ss:$8 sps:$4 sm:$0xff]   ;;  %v1137_v9 = vld [vmem:[#allocation7 + $0xd0] ss:$8 sps:$4 sm:$0xff]  }
  0x41   :  { %449 = vmatpush1.bf16.msra.mxu1 %v1087_v30  ;;  %v1142_v10 = vld [vmem:[#allocation7 + $0xc4] ss:$8 sps:$4 sm:$0xff]   ;;  %v1140_v11 = vld [vmem:[#allocation7 + $0xc0] ss:$8 sps:$4 sm:$0xff]   ;;  %v1145_v12 = vld [vmem:[#allocation7 + $0xb4] ss:$8 sps:$4 sm:$0xff]  }
  0x42   :  { %408 = vmatpush1.bf16.msra.mxu0 %v1051_v21  ;;  %450 = vmatprep.subr.bf16.mxu1 %v1090_v31  ;;  %v1143_v13 = vld [vmem:[#allocation7 + $0xb0] ss:$8 sps:$4 sm:$0xff]   ;;  %v1148_v14 = vld [vmem:[#allocation7 + $0xa4] ss:$8 sps:$4 sm:$0xff]   ;;  %v1146_v15 = vld [vmem:[#allocation7 + $0xa0] ss:$8 sps:$4 sm:$0xff]  }
  0x43   :  { %409 = vmatprep.subr.bf16.mxu0 %v1052_v24  ;;  %v1151_v16 = vld [vmem:[#allocation7 + $0x94] ss:$8 sps:$4 sm:$0xff]   ;;  %v1149_v17 = vld [vmem:[#allocation7 + $0x90] ss:$8 sps:$4 sm:$0xff]   ;;  %v1154_v18 = vld [vmem:[#allocation7 + $0x84] ss:$8 sps:$4 sm:$0xff]  }
  0x44   :  { %v1152_v19 = vld [vmem:[#allocation7 + $0x80] ss:$8 sps:$4 sm:$0xff]   ;;  %v130_v21 = vshrl.u32 %v129_v20, 7 }
  0x45   :  { %451 = vmatpush1.bf16.msra.mxu1 %v1093_v33  ;;  %v127_v23 = vld [vmem:[%s1381_s2] sm:$0x3] }
  0x46   :  { %410 = vmatpush1.bf16.msra.mxu0 %v1056_v26  ;;  %452 = vmatprep.subr.bf16.mxu1 %v1096_v35  ;;  %v1323_v22 = vsub.s32 0, %v130_v21  ;;  %v1328_v24 = vsub.s32 1, %v130_v21 }
  0x47   :  { %411 = vmatprep.subr.bf16.mxu0 %v1058_v28 }
  0x48   :  { %v132_v26 = vrot.slane %v127_v23, %v1323_v22  ;;  %v136_v27 = vrot.slane %v127_v23, %v1328_v24 }
  0x49   :  { %453 = vmatpush1.bf16.msra.mxu1 %v1099_v38 }
  0x4a   :  { %412 = vmatpush2.bf16.msra.mxu0 %v1062_v29  ;;  %772 = vmatprep.subr.bf16.mxu1 %v1109_v52 }
  0x4b   :  { %413 = vmatprep.subr.bf16.mxu0 %v1064_v32 }
  0x4c   :  { %471 = vmatmul.mubr.bf16.vlgmr.msra.gmra.mxu1 %v1102_v41 }
  0x4d   :  { %773 = vmatpush1.bf16.msra.mxu1 %v1107_v53 }
  0x4e   :  { %414 = vmatpush2.bf16.msra.mxu0 %v1068_v34  ;;  %774 = vmatprep.subr.bf16.mxu1 %v1112_v54 }
  0x4f   :  { %415 = vmatprep.subr.bf16.mxu0 %v1070_v36 }
  0x51   :  { %775 = vmatpush1.bf16.msra.mxu1 %v1110_v55 }
  0x52   :  { %416 = vmatpush2.bf16.msra.mxu0 %v1074_v39  ;;  %776 = vmatprep.subr.bf16.mxu1 %v1115_v56 }
  0x53   :  { %417 = vmatprep.subr.bf16.mxu0 %v1076_v40 }
  0x55   :  { %777 = vmatpush1.bf16.msra.mxu1 %v1113_v57 }
  0x56   :  { %418 = vmatpush2.bf16.msra.mxu0 %v1080_v42  ;;  %778 = vmatprep.subr.bf16.mxu1 %v1118_v58 }
  0x57   :  { %419 = vmatprep.subr.bf16.mxu0 %v1082_v43 }
  0x59   :  { %779 = vmatpush1.bf16.msra.mxu1 %v1116_v59 }
  0x5a   :  { %420 = vmatpush2.bf16.msra.mxu0 %v1086_v44  ;;  %780 = vmatprep.subr.bf16.mxu1 %v1121_v60 }
  0x5b   :  { %421 = vmatprep.subr.bf16.mxu0 %v1088_v45 }
  0x5d   :  { %781 = vmatpush1.bf16.msra.mxu1 %v1119_v61 }
  0x5e   :  { %422 = vmatpush2.bf16.msra.mxu0 %v1092_v46  ;;  %782 = vmatprep.subr.bf16.mxu1 %v1124_v62 }
  0x5f   :  { %423 = vmatprep.subr.bf16.mxu0 %v1094_v47 }
  0x61   :  { %783 = vmatpush1.bf16.msra.mxu1 %v1122_v63 }
  0x62   :  { %424 = vmatpush2.bf16.msra.mxu0 %v1098_v48  ;;  %784 = vmatprep.subr.bf16.mxu1 %v1127_v0 }
  0x63   :  { %425 = vmatprep.subr.bf16.mxu0 %v1100_v49 }
  0x65   :  { %785 = vmatpush1.bf16.msra.mxu1 %v1125_v1 }
  0x66   :  { %426 = vmatpush2.bf16.msra.mxu0 %v1103_v50  ;;  %786 = vmatprep.subr.bf16.mxu1 %v1130_v2 }
  0x69   :  { %428 = vmatmul.mubr.bf16.vlgmr.msra.gmra.mxu0 %v1104_v51  ;;  %787 = vmatpush1.bf16.msra.mxu1 %v1128_v3 }
  0x6a   :  { %788 = vmatprep.subr.bf16.mxu1 %v1133_v4 }
  0x6d   :  { %789 = vmatpush2.bf16.msra.mxu1 %v1131_v5 }
  0x6e   :  { %790 = vmatprep.subr.bf16.mxu1 %v1136_v6 }
  0x71   :  { %791 = vmatpush2.bf16.msra.mxu1 %v1134_v7 }
  0x72   :  { %792 = vmatprep.subr.bf16.mxu1 %v1139_v8 }
  0x75   :  { %793 = vmatpush2.bf16.msra.mxu1 %v1137_v9 }
  0x76   :  { %794 = vmatprep.subr.bf16.mxu1 %v1142_v10 }
  0x79   :  { %795 = vmatpush2.bf16.msra.mxu1 %v1140_v11 }
  0x7a   :  { %796 = vmatprep.subr.bf16.mxu1 %v1145_v12 }
  0x7d   :  { %797 = vmatpush2.bf16.msra.mxu1 %v1143_v13 }
  0x7e   :  { %798 = vmatprep.subr.bf16.mxu1 %v1148_v14 }
  0x81   :  { %799 = vmatpush2.bf16.msra.mxu1 %v1146_v15 }
  0x82   :  { %800 = vmatprep.subr.bf16.mxu1 %v1151_v16 }
  0x85   :  { %801 = vmatpush2.bf16.msra.mxu1 %v1149_v17 }
  0x86   :  { %802 = vmatprep.subr.bf16.mxu1 %v1154_v18 }
  0x89   :  { %803 = vmatpush2.bf16.msra.mxu1 %v1152_v19 }
 0x10c   :  { %v472_v25 = vpop.f32.mrf.mxu1 }
 0x10e   :  { %v474_v28 = vpop.f32.mrf.mxu1 }
 0x110   :  { %v476_v33 = vpop.f32.mrf.mxu1 }
 0x112   :  { %v478_v41 = vpop.f32.mrf.mxu1 }
 0x129   :  { %v429_v29 = vpop.f32.mrf.mxu0 }
 0x12a   :  { %v430_v30 = vadd.f32 %v429_v29, %v132_v26  ;;  %v486_v29 = vld [vmem:[%s1383_s4] sm:$0x3] }
 0x12b   :  { %v431_v31 = vpop.f32.mrf.mxu0 }
 0x12c   :  { %v432_v32 = vadd.f32 %v431_v31, %v136_v27  ;;  %v473_v35 = vadd.f32 %v472_v25, %v430_v30 }
 0x12d   :  { %v433_v34 = vpop.f32.mrf.mxu0 }
 0x12e   :  { %v434_v36 = vadd.f32 %v433_v34, %v132_v26  ;;  %v475_v38 = vadd.f32 %v474_v28, %v432_v32  ;;  %v481_v42 = vmax.f32 %v473_v35, 0.0  ;;  %v555_v35 = vrot.slane %v486_v29, %v1323_v22 }
 0x12f   :  { %v435_v37 = vpop.f32.mrf.mxu0 }
 0x130   :  { %v477_v39 = vadd.f32 %v476_v33, %v434_v36  ;;  %v436_v40 = vadd.f32 %v435_v37, %v136_v27  ;;  %v482_v45 = vmax.f32 %v475_v38, 0.0  ;;  %v485_v27 = vld [vmem:[%s1382_s3] sm:$0x3]  ;;  %v559_v36 = vrot.slane %v486_v29, %v1328_v24 }
 0x131   :  { %v540_v28 = vrot.slane %v485_v27, %v1323_v22  ;;  %v544_v33 = vrot.slane %v485_v27, %v1328_v24 }
 0x132   :  { %v483_v43 = vmax.f32 %v477_v39, 0.0  ;;  %v479_v44 = vadd.f32 %v478_v41, %v436_v40 }
 0x134   :  { %v487_v46 = vadd.f32 %v483_v43, %v481_v42  ;;  %v484_v47 = vmax.f32 %v479_v44, 0.0 }
 0x136   :  { %v488_v48 = vrot.slane %v487_v46, 4  ;;  %v494_v49 = vadd.f32 %v484_v47, %v482_v45 }
 0x138   :  { %v489_v50 = vadd.f32 %v488_v48, %v487_v46  ;;  %v495_v51 = vrot.slane %v494_v49, 4 }
 0x13a   :  { %v490_v52 = vrot.slane %v489_v50, 2  ;;  %v496_v53 = vadd.f32 %v495_v51, %v494_v49  ;;  %v600_v49 = vld [vmem:[%s1385_s6] sm:$0x3] }
 0x13c   :  { %v491_v54 = vadd.f32 %v490_v52, %v489_v50  ;;  %v497_v55 = vrot.slane %v496_v53, 2  ;;  %v605_v50 = vrot.slane %v600_v49, %v1323_v22  ;;  %v609_v52 = vrot.slane %v600_v49, %v1328_v24  ;;  %v820_v49 = vld [vmem:[%s1387_s8] sm:$0x3] }
 0x13e   :  { %v492_v56 = vrot.slane %v491_v54, 1  ;;  %v498_v57 = vadd.f32 %v497_v55, %v496_v53 }
 0x140   :  { %v493_v58 = vadd.f32 %v492_v56, %v491_v54  ;;  %v499_v59 = vrot.slane %v498_v57, 1 }
 0x142   :  { %v502_v60 = vmul.f32 0.0625, %v493_v58  ;;  %v500_v61 = vadd.f32 %v499_v59, %v498_v57 }
 0x144   :  { %v504_v62 = vsub.f32 %v481_v42, %v502_v60  ;;  %v506_v63 = vsub.f32 %v483_v43, %v502_v60  ;;  %v503_v0 = vmul.f32 0.0625, %v500_v61 }
 0x146   :  { %v508_v1 = vmul.f32 %v504_v62, %v504_v62  ;;  %v510_v2 = vmul.f32 %v506_v63, %v506_v63  ;;  %v505_v3 = vsub.f32 %v482_v45, %v503_v0  ;;  %v507_v4 = vsub.f32 %v484_v47, %v503_v0 }
 0x148   :  { %v512_v5 = vadd.f32 %v510_v2, %v508_v1  ;;  %v509_v6 = vmul.f32 %v505_v3, %v505_v3  ;;  %v511_v7 = vmul.f32 %v507_v4, %v507_v4 }
 0x14a   :  { %v513_v8 = vrot.slane %v512_v5, 4  ;;  %v519_v9 = vadd.f32 %v511_v7, %v509_v6 }
 0x14c   :  { %v514_v10 = vadd.f32 %v513_v8, %v512_v5  ;;  %v520_v11 = vrot.slane %v519_v9, 4 }
 0x14e   :  { %v515_v12 = vrot.slane %v514_v10, 2  ;;  %v521_v13 = vadd.f32 %v520_v11, %v519_v9 }
 0x150   :  { %v516_v14 = vadd.f32 %v515_v12, %v514_v10  ;;  %v522_v15 = vrot.slane %v521_v13, 2 }
 0x152   :  { %v517_v16 = vrot.slane %v516_v14, 1  ;;  %v523_v17 = vadd.f32 %v522_v15, %v521_v13 }
 0x154   :  { %v518_v18 = vadd.f32 %v517_v16, %v516_v14  ;;  %v524_v19 = vrot.slane %v523_v17, 1 }
 0x156   :  { %v526_v20 = vmul.f32 0.0625, %v518_v18  ;;  %v525_v21 = vadd.f32 %v524_v19, %v523_v17 }
 0x158   :  { %v528_v23 = vadd.f32 1e-05, %v526_v20  ;;  %v527_v25 = vmul.f32 0.0625, %v525_v21 }
 0x15a   :  { %1155 = vrsqrt.f32 %v528_v23  ;;  %v529_v26 = vadd.f32 1e-05, %v527_v25 }
 0x15c   :  { %1157 = vrsqrt.f32 %v529_v26 }
 0x167   :  { %v1156_v30 = vpop.eup %1155 }
 0x168   :  { %v532_v31 = vmul.f32 %v1156_v30, %v504_v62  ;;  %v534_v32 = vmul.f32 %v1156_v30, %v506_v63 }
 0x169   :  { %v1158_v34 = vpop.eup %1157 }
 0x16a   :  { %v549_v37 = vmul.f32 %v540_v28, %v534_v32  ;;  %v535_v38 = vmul.f32 %v1158_v34, %v507_v4  ;;  %v533_v39 = vmul.f32 %v1158_v34, %v505_v3  ;;  %v547_v40 = vmul.f32 %v540_v28, %v532_v31 }
 0x16c   :  { %v548_v41 = vmul.f32 %v544_v33, %v533_v39  ;;  %v550_v42 = vmul.f32 %v544_v33, %v535_v38  ;;  %v1342_v43 = vadd.f32 %v555_v35, %v547_v40  ;;  %v1344_v44 = vadd.f32 %v555_v35, %v549_v37 }
 0x16e   :  { %v1346_v45 = vadd.f32 %v559_v36, %v548_v41  ;;  %v1348_v46 = vadd.f32 %v559_v36, %v550_v42  ;;  %v566_v48 = vpack.c.bf16 %v1344_v44, %v1342_v43 }
 0x170   :  { %v567_v47 = vpack.c.bf16 %v1348_v46, %v1346_v45 }
 0x172   :  { %804 = vmatprep.mubr.bf16.mxu1 %v567_v47 }
 0x173   :  { %805 = vmatmul.mubr.bf16.vlgmr.msra.gmra.mxu1 %v566_v48  ;;  %v819_v48 = vld [vmem:[%s1386_s7] sm:$0x3]  ;;  %s1257_s7 = smov [#allocation8]  }
 0x174   :  { %s922_s8 = sshll.u32 %s1257_s7, 4  ;;  %s923_s8 = int_to_ptr.vmem [resolvable:$true] %s922_s8 }
 0x175   :  { %s1223_s14 = scalar_lea.vmem %s923_s8, 256  ;;  %p1228_p2 = scmp.lt.s32.totalorder %s923_s8, %s923_s8 }
 0x176   :  { %p1224_p1 = scmp.ne.s32.totalorder %s923_s8, %s1223_s14  ;;  %p1229_p3 = scmp.lt.s32.totalorder %s1223_s14, %s1223_s14 }
 0x178   :  { %p1230_p4 = por %p1229_p3, %p1228_p2 }
 0x17a   :  { %p1231_p5 = pnand %p1230_p4, %p1224_p1 }
 0x233   :  { %v806_v51 = vpop.f32.mrf.mxu1 }
 0x234   :  { %v807_v54 = vadd.f32 %v806_v51, %v605_v50 }
 0x235   :  { %v808_v53 = vpop.f32.mrf.mxu1 }
 0x236   :  { %v809_v56 = vadd.f32 %v808_v53, %v609_v52  ;;  %v815_v59 = vmax.f32 %v807_v54, 0.0  ;;  %v888_v54 = vrot.slane %v820_v49, %v1323_v22 }
 0x237   :  { %v810_v55 = vpop.f32.mrf.mxu1 }
 0x238   :  { %v811_v57 = vadd.f32 %v810_v55, %v605_v50  ;;  %v816_v62 = vmax.f32 %v809_v56, 0.0  ;;  %v873_v50 = vrot.slane %v819_v48, %v1323_v22  ;;  %v877_v55 = vrot.slane %v819_v48, %v1328_v24 }
 0x239   :  { %v812_v58 = vpop.f32.mrf.mxu1 }
 0x23a   :  { %v817_v60 = vmax.f32 %v811_v57, 0.0  ;;  %v813_v61 = vadd.f32 %v812_v58, %v609_v52  ;;  %v892_v57 = vrot.slane %v820_v49, %v1328_v24 }
 0x23c   :  { %v821_v63 = vadd.f32 %v817_v60, %v815_v59  ;;  %v818_v0 = vmax.f32 %v813_v61, 0.0 }
 0x23e   :  { %v822_v1 = vrot.slane %v821_v63, 4  ;;  %v828_v2 = vadd.f32 %v818_v0, %v816_v62 }
 0x240   :  { %v823_v3 = vadd.f32 %v822_v1, %v821_v63  ;;  %v829_v4 = vrot.slane %v828_v2, 4 }
 0x242   :  { %v824_v5 = vrot.slane %v823_v3, 2  ;;  %v830_v6 = vadd.f32 %v829_v4, %v828_v2 }
 0x244   :  { %v825_v7 = vadd.f32 %v824_v5, %v823_v3  ;;  %v831_v8 = vrot.slane %v830_v6, 2 }
 0x246   :  { %v826_v9 = vrot.slane %v825_v7, 1  ;;  %v832_v10 = vadd.f32 %v831_v8, %v830_v6 }
 0x248   :  { %v827_v11 = vadd.f32 %v826_v9, %v825_v7  ;;  %v833_v12 = vrot.slane %v832_v10, 1 }
 0x24a   :  { %v835_v13 = vmul.f32 0.0625, %v827_v11  ;;  %v834_v14 = vadd.f32 %v833_v12, %v832_v10 }
 0x24c   :  { %v837_v15 = vsub.f32 %v815_v59, %v835_v13  ;;  %v839_v16 = vsub.f32 %v817_v60, %v835_v13  ;;  %v836_v17 = vmul.f32 0.0625, %v834_v14 }
 0x24e   :  { %v841_v18 = vmul.f32 %v837_v15, %v837_v15  ;;  %v843_v19 = vmul.f32 %v839_v16, %v839_v16  ;;  %v838_v20 = vsub.f32 %v816_v62, %v836_v17  ;;  %v840_v21 = vsub.f32 %v818_v0, %v836_v17 }
 0x250   :  { %v845_v23 = vadd.f32 %v843_v19, %v841_v18  ;;  %v842_v25 = vmul.f32 %v838_v20, %v838_v20  ;;  %v844_v26 = vmul.f32 %v840_v21, %v840_v21 }
 0x252   :  { %v846_v27 = vrot.slane %v845_v23, 4  ;;  %v852_v28 = vadd.f32 %v844_v26, %v842_v25 }
 0x254   :  { %v847_v29 = vadd.f32 %v846_v27, %v845_v23  ;;  %v853_v30 = vrot.slane %v852_v28, 4 }
 0x256   :  { %v848_v31 = vrot.slane %v847_v29, 2  ;;  %v854_v32 = vadd.f32 %v853_v30, %v852_v28 }
 0x258   :  { %v849_v33 = vadd.f32 %v848_v31, %v847_v29  ;;  %v855_v34 = vrot.slane %v854_v32, 2 }
 0x25a   :  { %v850_v35 = vrot.slane %v849_v33, 1  ;;  %v856_v36 = vadd.f32 %v855_v34, %v854_v32 }
 0x25c   :  { %v851_v37 = vadd.f32 %v850_v35, %v849_v33  ;;  %v857_v38 = vrot.slane %v856_v36, 1 }
 0x25e   :  { %v859_v39 = vmul.f32 0.0625, %v851_v37  ;;  %v858_v40 = vadd.f32 %v857_v38, %v856_v36 }
 0x260   :  { %v861_v41 = vadd.f32 1e-05, %v859_v39  ;;  %v860_v42 = vmul.f32 0.0625, %v858_v40 }
 0x262   :  { %1159 = vrsqrt.f32 %v861_v41  ;;  %v862_v47 = vadd.f32 1e-05, %v860_v42 }
 0x264   :  { %1161 = vrsqrt.f32 %v862_v47 }
 0x26f   :  { %v1160_v51 = vpop.eup %1159 }
 0x270   :  { %v865_v52 = vmul.f32 %v1160_v51, %v837_v15  ;;  %v867_v53 = vmul.f32 %v1160_v51, %v839_v16 }
 0x271   :  { %v1162_v56 = vpop.eup %1161 }
 0x272   :  { %v880_v58 = vmul.f32 %v873_v50, %v865_v52  ;;  %v882_v59 = vmul.f32 %v873_v50, %v867_v53  ;;  %v866_v60 = vmul.f32 %v1162_v56, %v838_v20  ;;  %v868_v61 = vmul.f32 %v1162_v56, %v840_v21 }
 0x274   :  { %v897_v62 = vadd.f32 %v888_v54, %v882_v59  ;;  %v881_v63 = vmul.f32 %v877_v55, %v866_v60  ;;  %v883_v0 = vmul.f32 %v877_v55, %v868_v61  ;;  %v895_v1 = vadd.f32 %v888_v54, %v880_v58 }
 0x276   :  { %v898_v2 = vadd.f32 %v892_v57, %v883_v0  ;;  %v896_v3 = vadd.f32 %v892_v57, %v881_v63  ;;  %v899_v4 = vadd.f32 %v895_v1, %v1342_v43  ;;  %v901_v5 = vadd.f32 %v897_v62, %v1344_v44 }
 0x278   :  { %v900_v22 = vadd.f32 %v896_v3, %v1346_v45  ;;  %v902_v24 = vadd.f32 %v898_v2, %v1348_v46 }
 0x27a   :  { %v1020_v6 = vpack.c.bf16 %v900_v22, %v899_v4  ;;  %v1021_v7 = vpack.c.bf16 %v902_v24, %v901_v5 }
 0x27c   :  { %915 = vst [vmem:[#allocation8] sm:$0xff] %v1020_v6  ;;  %916 = vst [vmem:[#allocation8 + $0x8] sm:$0xff] %v1021_v7 }
 0x27d   :  { %1234 = shalt.err (!%p1231_p5)
}
 0x27e   :  { %928 = dma.vmem_to_hbm [thread:$0]  %s923_s8, 256, %s1388_s9, [#allocation4], %s1250_s12, %s1250_s12, %s1251_s13  }
 0x27f   :  { %1247 = dma.done.wait [#allocation4], 256  }
 0x280   :  { %1248 = vsyncadd [#allocation4], 4294967040 }
 0x281   :  { %932 = vsyncpa [#allocation3], 1 }
 0x282   :  { %933 = vsyncpa [#allocation6], 1 }
 0x283   :  { %934 = vsyncpa [#allocation4], 1 }

</bundles_post_ra>
